<compile_context>
chip_gen: v7x
topology: tpu7x:2x2x1
jax: 0.10.0
libtpu: 0.0.40
codegen_flags: <defaults>
</compile_context>

<pallas_src>
import jax
import jax.numpy as jnp
from jax.experimental import pallas as pl
from jax.experimental.pallas import tpu as pltpu


def _round_up(x, m):
    return (x + m - 1) // m * m


def _patch_embed_kernel(x_ref, w_ref, b_ref, o_ref):
    # x_ref: (tm, K)  streamed row tile of flattened patches
    # w_ref: (K, E)   VMEM-resident projection matrix
    # b_ref: (1, E)   VMEM-resident bias (f32)
    # o_ref: (tm, E)  output tile
    acc = jnp.dot(x_ref[...], w_ref[...], preferred_element_type=jnp.float32)
    o_ref[...] = (acc + b_ref[...]).astype(o_ref.dtype)


def _vmem_budget_bytes():
    """(usable budget, physical capacity) for the current chip generation."""
    try:
        cap = int(pltpu.get_tpu_info().vmem_capacity_bytes)
    except Exception:  # interpret mode / unknown chip: assume v7x-sized VMEM
        cap = 64 * 1024 * 1024
    # Half of physical VMEM, capped at 64 MiB: ~64 MiB on v5e/v6e (128 MiB
    # physical), ~32 MiB on v7x (64 MiB per TensorCore).
    return min(cap // 2, 64 * 1024 * 1024), cap


def _choose_tile_m(M, max_rows):
    """Balanced row-tile: fits VMEM, >=2 grid steps for big problems (v7x
    megacore), rounded to MXU-native rows."""
    SUB = 8      # f32 sublane quantum (accumulation is f32)
    MXU = 256    # native MXU rows on v6e/v7x (multiple of v5e's 128)
    cap = max(SUB, (max_rows // SUB) * SUB)
    n_tiles = pl.cdiv(M, cap)
    if n_tiles == 1 and M >= 2 * MXU:
        n_tiles = 2                              # keep both v7x cores busy
    tm = pl.cdiv(M, n_tiles)                     # balanced -> minimal ragged tail
    quantum = MXU if (cap >= MXU and tm >= MXU) else SUB
    return min(_round_up(tm, quantum), cap)


def patch_embed(x, weight, bias, patch_size, *, compute_dtype=None, tile_m=None):
    """x: (B, C, L); weight: (E, C, P); bias: (E,). Returns (B, L // P, E)."""
    B, C, L = x.shape
    E = weight.shape[0]
    P = patch_size
    N = L // P                  # PyTorch Conv1d silently drops the remainder
    out_dtype = x.dtype
    if N == 0:                  # degenerate L < P
        return jnp.zeros((B, 0, E), dtype=out_dtype)

    M = B * N
    K = C * P
    in_dtype = compute_dtype if compute_dtype is not None else x.dtype
    in_bytes = jnp.dtype(in_dtype).itemsize
    out_bytes = jnp.dtype(out_dtype).itemsize

    # ---- glue: patchify into a plain (M, K) GEMM problem --------------------
    # One fused XLA copy: (B, C, N, P) -> (B, N, C, P) -> (B*N, C*P).  Row-major
    # (c, p) matches the PyTorch Conv1d weight layout.  No padding of K/E/M.
    x = x[:, :, : N * P]
    x_patches = (x.reshape(B, C, N, P).transpose(0, 2, 1, 3)
                  .reshape(M, K).astype(in_dtype))
    w_mat = weight.reshape(E, K).T.astype(in_dtype)      # (K, E), VMEM resident
    b_row = bias.astype(jnp.float32).reshape(1, E)       # (1, E), VMEM resident

    # ---- generation-aware VMEM budget & tile selection -----------------------
    budget, vmem_cap = _vmem_budget_bytes()
    # VMEM footprints pad to (8, 128) tiles; resident operands and the streamed
    # x/out tiles are all double-buffered by the BlockSpec pipeline.
    w_bytes = _round_up(K, 8) * _round_up(E, 128) * in_bytes
    b_bytes = 8 * _round_up(E, 128) * 4
    x_row = _round_up(K, 128) * in_bytes
    o_row = _round_up(E, 128) * out_bytes
    fixed = 2 * (w_bytes + b_bytes)
    per_row = 2 * (x_row + o_row)
    max_rows = max(8, (budget - fixed) // per_row)

    tm = int(tile_m) if tile_m is not None else _choose_tile_m(M, max_rows)
    tm = max(8, _round_up(min(tm, _round_up(M, 8)), 8))

    need = fixed + tm * per_row
    vmem_limit = int(min(vmem_cap - (4 << 20), max(need + (4 << 20), 32 << 20)))
    vmem_limit = max(vmem_limit, need + (1 << 20))

    grid = (pl.cdiv(M, tm),)        # ragged last tile handled by Pallas

    out = pl.pallas_call(
        _patch_embed_kernel,
        out_shape=jax.ShapeDtypeStruct((M, E), out_dtype),
        grid_spec=pltpu.PrefetchScalarGridSpec(
            num_scalar_prefetch=0,
            grid=grid,
            in_specs=[
                pl.BlockSpec((tm, K), lambda i: (i, 0)),  # streamed rows, full K
                pl.BlockSpec((K, E), lambda i: (0, 0)),   # resident weight
                pl.BlockSpec((1, E), lambda i: (0, 0)),   # resident bias
            ],
            out_specs=pl.BlockSpec((tm, E), lambda i: (i, 0)),
        ),
        compiler_params=pltpu.CompilerParams(
            dimension_semantics=("parallel",),
            vmem_limit_bytes=vmem_limit),
        cost_estimate=pl.CostEstimate(
            flops=2 * M * K * E,
            transcendentals=0,
            bytes_accessed=in_bytes * (M * K + K * E) + 4 * E + out_bytes * M * E),
    )(x_patches, w_mat, b_row)

    # Metadata-only split of the leading dim: bit-identical layout (free) since
    # the kernel output is already exactly (B*N, E) with no padding.
    return out.reshape(B, N, E)


if __name__ == "__main__":
    # PatchEmbed(in_channels=4, embed_dim=32, patch_size=10) on a (2, 4, 80) input.
    B, C_in, P = 2, 4, 10
    E = 32
    N_patches = 8
    L = N_patches * P  # 80

    key = jax.random.PRNGKey(0)
    kx, kw, kb = jax.random.split(key, 3)
    x = jax.random.normal(kx, (B, C_in, L), dtype=jnp.float32)
    weight = jax.random.normal(kw, (E, C_in, P), dtype=jnp.float32) * 0.05
    bias = jax.random.normal(kb, (E,), dtype=jnp.float32) * 0.05

    fn = jax.jit(patch_embed,
                 static_argnames=("patch_size", "compute_dtype", "tile_m"))
    out = jax.block_until_ready(fn(x, weight, bias, patch_size=P))

    # Reference: nn.Conv1d(kernel_size=stride=P) followed by transpose(1, 2).
    x_patches = x.reshape(B, C_in, N_patches, P).transpose(0, 2, 1, 3).reshape(
        B * N_patches, C_in * P)
    ref = (x_patches @ weight.reshape(E, C_in * P).T + bias).reshape(
        B, N_patches, E)

    assert out.shape == (B, N_patches, E)
    assert jnp.allclose(out, ref, atol=1e-4, rtol=1e-4)

    print("KERNEL_OK")
</pallas_src>

<mosaic_0001>
module attributes {stable_mosaic.version = 11 : i64} {
  func.func @_patch_embed_kernel(%arg0: i32, %arg1: memref<16x40xf32, #tpu.memory_space<vmem>>, %arg2: memref<40x32xf32, #tpu.memory_space<vmem>>, %arg3: memref<1x32xf32, #tpu.memory_space<vmem>>, %arg4: memref<16x32xf32, #tpu.memory_space<vmem>>) attributes {dimension_semantics = [#tpu.dimension_semantics<parallel>], iteration_bounds = array<i64: 1>, scalar_prefetch = 0 : i64, scratch_operands = 0 : i64, tpu.core_type = #tpu.core_type<tc>, window_params = [{transform_indices = @transform_0, window_bounds = array<i64: 16, 40>}, {pipeline_mode = #tpu.pipeline_mode<synchronous>, transform_indices = @transform_1, window_bounds = array<i64: 40, 32>}, {pipeline_mode = #tpu.pipeline_mode<synchronous>, transform_indices = @transform_2, window_bounds = array<i64: 1, 32>}, {transform_indices = @transform_3, window_bounds = array<i64: 16, 32>}]} {
    %c0 = arith.constant 0 : index
    %c0_0 = arith.constant 0 : index
    %0 = vector.load %arg1[%c0, %c0_0] : memref<16x40xf32, #tpu.memory_space<vmem>>, vector<16x40xf32>
    %c0_1 = arith.constant 0 : index
    %c0_2 = arith.constant 0 : index
    %1 = vector.load %arg2[%c0_1, %c0_2] : memref<40x32xf32, #tpu.memory_space<vmem>>, vector<40x32xf32>
    %cst = arith.constant dense<0.000000e+00> : vector<16x32xf32>
    %2 = tpu.matmul %0, %1, %cst {dimension_numbers = #tpu.dot_dimension_numbers<[1], [0], [0], [1], [0, 0, 1, 1], [], []>} : vector<16x40xf32>, vector<40x32xf32>, vector<16x32xf32> -> vector<16x32xf32>
    %c0_3 = arith.constant 0 : index
    %c0_4 = arith.constant 0 : index
    %3 = vector.load %arg3[%c0_3, %c0_4] : memref<1x32xf32, #tpu.memory_space<vmem>>, vector<1x32xf32>
    %4 = vector.broadcast %3 : vector<1x32xf32> to vector<16x32xf32>
    %5 = arith.addf %2, %4 : vector<16x32xf32>
    %c0_5 = arith.constant 0 : index
    %c0_6 = arith.constant 0 : index
    %6 = vector.load %arg4[%c0_5, %c0_6] : memref<16x32xf32, #tpu.memory_space<vmem>>, vector<16x32xf32>
    tpu.vector_store %arg4[%c0_5, %c0_6], %5 {strides = array<i32>} : memref<16x32xf32, #tpu.memory_space<vmem>>, vector<16x32xf32>,
    return
  }
  func.func @transform_0(%arg0: i32) -> (i32, i32) {
    %c0_i32 = arith.constant 0 : i32
    %c0_i32_0 = arith.constant 0 : i32
    return %arg0, %c0_i32 : i32, i32
  }
  func.func @transform_1(%arg0: i32) -> (i32, i32) {
    %c0_i32 = arith.constant 0 : i32
    %c0_i32_0 = arith.constant 0 : i32
    %c0_i32_1 = arith.constant 0 : i32
    return %c0_i32, %c0_i32_0 : i32, i32
  }
  func.func @transform_2(%arg0: i32) -> (i32, i32) {
    %c0_i32 = arith.constant 0 : i32
    %c0_i32_0 = arith.constant 0 : i32
    %c0_i32_1 = arith.constant 0 : i32
    return %c0_i32, %c0_i32_0 : i32, i32
  }
  func.func @transform_3(%arg0: i32) -> (i32, i32) {
    %c0_i32 = arith.constant 0 : i32
    %c0_i32_0 = arith.constant 0 : i32
    return %arg0, %c0_i32 : i32, i32
  }
}

</mosaic_0001>

<bundles_post_ra>
// kernel: patch_embed.1
= control target key start
LH: loop header
LB: loop body
LE: loop exit
PB: predicated region body
PF: predicated region fallthrough
CT: control target
= control target key end

     0   :  { %vm29_vm0 = vcmask 326656   ;;  %s247_s0 = inlined_call_operand.vmem [shape: f32[16,40], index: 0, kind: input, shape index: {}]   ;;  %s248_s1 = inlined_call_operand.vmem [shape: f32[40,32], index: 1, kind: input, shape index: {}]   ;;  %s249_s2 = inlined_call_operand.vmem [shape: f32[1,32], index: 2, kind: input, shape index: {}]   ;;  %s250_s3 = inlined_call_operand.hbm [shape: f32[16,32], index: 3, kind: output, shape index: {}]  }
   0x1   :  { %v17_v0 = vld [vmem:[%s248_s1] sm:$0xff]  ;;  %v18_v1 = vld [vmem:[%s248_s1 + $0x8] sm:$0xff]  ;;  %v19_v2 = vld [vmem:[%s248_s1 + $0x10] sm:$0xff] }
   0x2   :  { %v153_v3 = vpack.c.bf16 %v18_v1, %v17_v0  ;;  %v20_v4 = vld [vmem:[%s248_s1 + $0x18] sm:$0xff]  ;;  %v15_v5 = vld [vmem:[%s247_s0] sm:$0xff] }
   0x3   :  { %v157_v6 = vpack.c.bf16 %v20_v4, %v19_v2  ;;  %150 = vmatprep.mubr.msk.f32.mxu0 %vm29_vm0, %v15_v5 }
   0x4   :  { %8 = vsyncpa [#allocation3], 0  ;;  %154 = vmatprep.subr.bf16.mxu0 %v153_v3  ;;  %v21_v7 = vld [vmem:[%s248_s1 + $0x20] sm:$0xff]  ;;  %v16_v8 = vld [vmem:[%s247_s0 + $0x8] sm:$0xff]  ;;  %s188_s28 = smov [#allocation2]   ;;  %vm111_vm1 = vcmask 261120  }
   0x5   :  { %156 = vmatpush3.bf16.msra.mxu0 %v153_v3  ;;  %v130_v9 = vld [vmem:[%s249_s2] ss:$0 sm:$0xff]  ;;  %s119_s29 = sshll.u32 %s188_s28, 4  ;;  %s120_s29 = int_to_ptr.vmem [resolvable:$true] %s119_s29 }
   0x6   :  { %158 = vmatprep.subr.bf16.mxu0 %v157_v6  ;;  %s164_s1 = scalar_lea.vmem %s120_s29, 256  ;;  %p169_p1 = scmp.lt.s32.totalorder %s120_s29, %s120_s29 }
   0x7   :  { %p165_p0 = scmp.ne.s32.totalorder %s120_s29, %s164_s1  ;;  %p170_p2 = scmp.lt.s32.totalorder %s164_s1, %s164_s1 }
   0x9   :  { %160 = vmatpush3.bf16.msra.mxu0 %v157_v6  ;;  %p171_p3 = por %p170_p2, %p169_p1 }
   0xa   :  { %148 = vmatprep.subr.mxu0 %v21_v7 }
   0xb   :  { %p172_p4 = pnand %p171_p3, %p165_p0 }
   0xd   :  { %149 = vmatpush3.msra.mxu0 %v21_v7 }
   0xe   :  { %151 = vmatmul.mubr.msk.f32.vlgmr.msra.gmra.mrb[0].mxu0 %vm29_vm0, %v16_v8 }
  0xe1   :  { %v152_v10 = vpop.f32.mrb[0].mxu0 }
  0xe2   :  { %v108_v11 = vadd.f32 %v152_v10, %v130_v9  ;;  %v102_v12 = vpop.f32.mrb[1].mxu0 }
  0xe3   :  { %v103_v13 = vadd.f32 %v130_v9, %v102_v12 }
  0xe4   :  { %113 = vst.msk [vmem:[#allocation2 + $0x8] sm:$0xff] %vm111_vm1, %v108_v11 }
  0xe5   :  { %112 = vst.msk [vmem:[#allocation2] sm:$0xff] %vm111_vm1, %v103_v13 }
  0xe6   :  { %175 = shalt.err (!%p172_p4)
}
  0xe7   :  { %s176_s2 = scalar_lea.hbm %s250_s3, 256 }
  0xe8   :  { %p177_p5 = scmp.ne.s32.totalorder %s250_s3, %s176_s2  ;;  %p180_p6 = scmp.lt.u32.totalorder %s176_s2, %s250_s3 }
  0xea   :  { %p182_p7 = pnand %p180_p6, %p177_p5 }
  0xec   :  { %185 = shalt.err (!%p182_p7)
}
  0xed   :  { %s189_s8 = smov 128   ;;  %s190_s9 = smov 8  }
  0xee   :  { %125 = dma.vmem_to_hbm [thread:$0]  %s120_s29, 256, %s250_s3, [#allocation3], %s189_s8, %s189_s8, %s190_s9  }
  0xef   :  { %186 = dma.done.wait [#allocation3], 256  }
  0xf0   :  { %187 = vsyncadd [#allocation3], 4294967040 }
  0xf1   :  { %129 = vsyncpa [#allocation3], 1 }

</bundles_post_ra>
